<compile_context>
chip_gen: v6e
topology: v6e:2x2x1
jax: 0.10.0
libtpu: 0.0.40
codegen_flags: <defaults>
</compile_context>

<pallas_src>
import jax
import jax.numpy as jnp
from jax import lax
from jax.experimental import pallas as pl
from jax.experimental.pallas import tpu as pltpu


def _sentence_repr_kernel(x_ref, attrel_ref, s_ref, lg_ref):
    # SenSoftAtt: softmax over a size-1 dim => alpha == 1 exactly, so the
    # tanh / wei_mat logit path contributes nothing; bmm(alpha, x) == x.sum(L).
    s = jnp.sum(x_ref[...], axis=1)                              # (n_tile, D_pad)
    s_ref[...] = s
    # Attention._attention_train_logit: sum(x * att[q] * rel[q], dim=1, keepdim)
    lg_ref[...] = jnp.sum(s * attrel_ref[...], axis=-1, keepdims=True)  # (n_tile, 1)


def _bag_attention_kernel(s_ref, lg_ref, lo_ref, hi_ref, relwT_ref, bias_ref, out_ref):
    num_bags = out_ref.shape[0]
    n_pad = s_ref.shape[0]

    lg_row = lg_ref[...]                                          # (1, n_pad)
    col = lax.broadcasted_iota(jnp.int32, (num_bags, n_pad), 1)
    in_bag = (col >= lo_ref[...]) & (col < hi_ref[...])           # (num_bags, n_pad)

    neg_inf = jnp.float32(-jnp.inf)
    masked = jnp.where(in_bag, lg_row, neg_inf)                   # (num_bags, n_pad)
    m = jnp.max(masked, axis=-1, keepdims=True)                   # (num_bags, 1)
    e = jnp.where(in_bag, jnp.exp(masked - m), 0.0)               # 0 outside bag / padding
    denom = jnp.sum(e, axis=-1, keepdims=True)
    scores = e / jnp.maximum(denom, 1e-30)                        # empty-bag guard (no NaN)

    # Batched bag-weighted sum + classification, both on the MXU.
    repre = jnp.dot(scores, s_ref[...], preferred_element_type=jnp.float32)   # (nb, D_pad)
    # TODO(synk): nn.Dropout omitted (eval-mode identity); training-mode mask not implemented.
    out_ref[...] = (jnp.dot(repre, relwT_ref[...], preferred_element_type=jnp.float32)
                    + bias_ref[...])


def sen_soft_and_bag_soft_attention(x, scope, attention_query, params, *, n_tile=64):
    """x: (n, L, D) f32; scope: (num_bags+1,) i32; attention_query: (n,) i32."""
    n, L, D = x.shape
    rel_w = params["rel_w"]            # (C, D)
    att_w = params["att_w"]            # (C, D)
    bias = params["bias"]              # (C,)
    # params["wei_mat"] is part of the module but numerically dead (alpha == 1).
    C = rel_w.shape[0]
    num_bags = int(scope.shape[0]) - 1

    n_tile = max(8, (int(n_tile) // 8) * 8)          # sublane-aligned tile
    n_tiles = pl.cdiv(n, n_tile)
    n_pad = n_tiles * n_tile
    D_pad = ((D + 127) // 128) * 128                 # lane-dense contraction dim
    C_pad = ((C + 127) // 128) * 128                 # lane-dense output stores

    # ---- glue (plain XLA): embedding gather, zero-padding, transposes ----------
    attrel = (att_w * rel_w)[attention_query]                              # (n, D)
    x_p = jnp.pad(x.astype(jnp.float32),
                  ((0, n_pad - n), (0, 0), (0, D_pad - D)))
    attrel_p = jnp.pad(attrel.astype(jnp.float32),
                       ((0, n_pad - n), (0, D_pad - D)))
    relwT_p = jnp.pad(rel_w.T.astype(jnp.float32),
                      ((0, D_pad - D), (0, C_pad - C)))
    bias_p = jnp.pad(bias.astype(jnp.float32), (0, C_pad - C)).reshape(1, C_pad)
    scope_i = scope.astype(jnp.int32)
    lo = scope_i[:-1].reshape(num_bags, 1)
    hi = scope_i[1:].reshape(num_bags, 1)

    # ---- kernel 1: pipelined sentence representations over n-tiles -------------
    blk_bytes = (n_tile * L * D_pad + 2 * n_tile * D_pad + n_tile * 128) * 4
    vmem_limit = max(8 << 20, min(int(2.5 * blk_bytes) + (2 << 20), 48 << 20))

    s_pad, lg_col = pl.pallas_call(
        _sentence_repr_kernel,
        out_shape=(jax.ShapeDtypeStruct((n_pad, D_pad), jnp.float32),
                   jax.ShapeDtypeStruct((n_pad, 1), jnp.float32)),
        grid=(n_tiles,),
        in_specs=[
            pl.BlockSpec((n_tile, L, D_pad), lambda i: (i, 0, 0)),
            pl.BlockSpec((n_tile, D_pad), lambda i: (i, 0)),
        ],
        out_specs=(
            pl.BlockSpec((n_tile, D_pad), lambda i: (i, 0)),
            pl.BlockSpec((n_tile, 1), lambda i: (i, 0)),
        ),
        compiler_params=pltpu.CompilerParams(
            dimension_semantics=("parallel",),
            vmem_limit_bytes=vmem_limit),
    )(x_p, attrel_p)

    lg_row = lg_col.reshape(1, n_pad)   # lane-major logits for the batched softmax

    # ---- kernel 2: all bags batched in one step (masked softmax + 2 matmuls) ----
    logits_pad = pl.pallas_call(
        _bag_attention_kernel,
        out_shape=jax.ShapeDtypeStruct((num_bags, C_pad), jnp.float32),
        grid=(1,),
        in_specs=[
            pl.BlockSpec((n_pad, D_pad), lambda i: (0, 0)),
            pl.BlockSpec((1, n_pad), lambda i: (0, 0)),
            pl.BlockSpec((num_bags, 1), lambda i: (0, 0)),
            pl.BlockSpec((num_bags, 1), lambda i: (0, 0)),
            pl.BlockSpec((D_pad, C_pad), lambda i: (0, 0)),
            pl.BlockSpec((1, C_pad), lambda i: (0, 0)),
        ],
        out_specs=pl.BlockSpec((num_bags, C_pad), lambda i: (0, 0)),
        compiler_params=pltpu.CompilerParams(dimension_semantics=("arbitrary",)),
    )(s_pad, lg_row, lo, hi, relwT_p, bias_p)

    return logits_pad[:, :C]


def reference(x, scope, attention_query, params):
    """Pure-JAX replica of the PyTorch forward (eval-mode dropout), incl. dead tanh path."""
    n, L, D = x.shape
    W = jnp.tanh(x)
    sl = W.reshape(-1, D) @ params["wei_mat"]                    # (n*L, 1)
    alpha = jax.nn.softmax(sl, axis=1).reshape(n, 1, L)          # all ones
    s = jnp.squeeze(alpha @ x, axis=1)                           # (n, D)
    att = params["att_w"][attention_query]
    rq = params["rel_w"][attention_query]
    att_logit = jnp.sum(s * att * rq, axis=1, keepdims=True)     # (n, 1)
    sc = [int(v) for v in scope]
    reprs = []
    for i in range(len(sc) - 1):
        lo, hi = sc[i], sc[i + 1]
        sen = s[lo:hi]
        w = jax.nn.softmax(att_logit[lo:hi].T, axis=1)           # (1, bag)
        reprs.append((w @ sen)[0])
    stack = jnp.stack(reprs)                                     # (num_bags, D)
    return stack @ params["rel_w"].T + params["bias"]            # (num_bags, C)


if __name__ == "__main__":
    # Small shapes consistent with the module: n sentences, max_length L,
    # encoder_output_dim D, num_classes C, bags defined by `scope`.
    n, L, D, C = 24, 8, 32, 5
    scope = jnp.array([0, 3, 5, 10, 17, 24], dtype=jnp.int32)    # 5 bags
    num_bags = scope.shape[0] - 1

    key = jax.random.PRNGKey(0)
    k = jax.random.split(key, 6)
    x = jax.random.normal(k[0], (n, L, D), jnp.float32)
    attention_query = jax.random.randint(k[1], (n,), 0, C, dtype=jnp.int32)

    params = {
        # SenSoftAtt.wei_mat: xavier_normal_ (D, 1)  (numerically dead in forward)
        "wei_mat": jax.nn.initializers.xavier_normal()(k[2], (D, 1), jnp.float32),
        # Attention.relation_matrix / attention_matrix: xavier_uniform_ (C, D)
        "rel_w": jax.nn.initializers.xavier_uniform()(k[3], (C, D), jnp.float32),
        "att_w": jax.nn.initializers.xavier_uniform()(k[4], (C, D), jnp.float32),
        # Attention.bias: normal_ (C,)
        "bias": jax.random.normal(k[5], (C,), jnp.float32),
    }

    out = sen_soft_and_bag_soft_attention(x, scope, attention_query, params, n_tile=8)
    out = jax.block_until_ready(out)

    ref = reference(x, scope, attention_query, params)
    assert out.shape == (num_bags, C), out.shape
    assert jnp.allclose(out, ref, atol=1e-4, rtol=1e-4), (out, ref)
    print("KERNEL_OK")
</pallas_src>

<mosaic_0001>
module attributes {stable_mosaic.version = 11 : i64} {
  func.func @_sentence_repr_kernel(%arg0: i32, %arg1: memref<8x8x128xf32, #tpu.memory_space<vmem>>, %arg2: memref<8x128xf32, #tpu.memory_space<vmem>>, %arg3: memref<8x128xf32, #tpu.memory_space<vmem>>, %arg4: memref<8x1xf32, #tpu.memory_space<vmem>>) attributes {dimension_semantics = [#tpu.dimension_semantics<parallel>], iteration_bounds = array<i64: 3>, scalar_prefetch = 0 : i64, scratch_operands = 0 : i64, tpu.core_type = #tpu.core_type<tc>, window_params = [{transform_indices = @transform_0, window_bounds = array<i64: 8, 8, 128>}, {transform_indices = @transform_1, window_bounds = array<i64: 8, 128>}, {transform_indices = @transform_2, window_bounds = array<i64: 8, 128>}, {transform_indices = @transform_3, window_bounds = array<i64: 8, 1>}]} {
    %c0 = arith.constant 0 : index
    %c0_0 = arith.constant 0 : index
    %c0_1 = arith.constant 0 : index
    %0 = vector.load %arg1[%c0, %c0_0, %c0_1] : memref<8x8x128xf32, #tpu.memory_space<vmem>>, vector<8x8x128xf32>
    %cst = arith.constant dense<0.000000e+00> : vector<8x128xf32>
    %1 = vector.multi_reduction <add>, %0, %cst [1] : vector<8x8x128xf32> to vector<8x128xf32>
    %c0_2 = arith.constant 0 : index
    %c0_3 = arith.constant 0 : index
    %2 = vector.load %arg3[%c0_2, %c0_3] : memref<8x128xf32, #tpu.memory_space<vmem>>, vector<8x128xf32>
    tpu.vector_store %arg3[%c0_2, %c0_3], %1 {strides = array<i32>} : memref<8x128xf32, #tpu.memory_space<vmem>>, vector<8x128xf32>,
    %c0_4 = arith.constant 0 : index
    %c0_5 = arith.constant 0 : index
    %3 = vector.load %arg2[%c0_4, %c0_5] : memref<8x128xf32, #tpu.memory_space<vmem>>, vector<8x128xf32>
    %4 = arith.mulf %1, %3 : vector<8x128xf32>
    %cst_6 = arith.constant dense<0.000000e+00> : vector<8xf32>
    %5 = vector.multi_reduction <add>, %4, %cst_6 [1] : vector<8x128xf32> to vector<8xf32>
    %6 = vector.shape_cast %5 : vector<8xf32> to vector<8x1xf32>
    %c0_7 = arith.constant 0 : index
    %c0_8 = arith.constant 0 : index
    %7 = vector.load %arg4[%c0_7, %c0_8] : memref<8x1xf32, #tpu.memory_space<vmem>>, vector<8x1xf32>
    tpu.vector_store %arg4[%c0_7, %c0_8], %6 {strides = array<i32>} : memref<8x1xf32, #tpu.memory_space<vmem>>, vector<8x1xf32>,
    return
  }
  func.func @transform_0(%arg0: i32) -> (i32, i32, i32) {
    %c0_i32 = arith.constant 0 : i32
    %c0_i32_0 = arith.constant 0 : i32
    %c0_i32_1 = arith.constant 0 : i32
    return %arg0, %c0_i32, %c0_i32_0 : i32, i32, i32
  }
  func.func @transform_1(%arg0: i32) -> (i32, i32) {
    %c0_i32 = arith.constant 0 : i32
    %c0_i32_0 = arith.constant 0 : i32
    return %arg0, %c0_i32 : i32, i32
  }
  func.func @transform_2(%arg0: i32) -> (i32, i32) {
    %c0_i32 = arith.constant 0 : i32
    %c0_i32_0 = arith.constant 0 : i32
    return %arg0, %c0_i32 : i32, i32
  }
  func.func @transform_3(%arg0: i32) -> (i32, i32) {
    %c0_i32 = arith.constant 0 : i32
    %c0_i32_0 = arith.constant 0 : i32
    return %arg0, %c0_i32 : i32, i32
  }
}

</mosaic_0001>

<bundles_post_ra>
// kernel: tpu_custom_call.1
= control target key start
LH: loop header
LB: loop body
LE: loop exit
PB: predicated region body
PF: predicated region fallthrough
CT: control target
= control target key end

     0   :  { %9 = vsyncpa [#allocation3], 0  ;;  %s925_s0 = inlined_call_operand.hbm [shape: f32[24,8,128], index: 0, kind: input, shape index: {}]   ;;  %s926_s1 = inlined_call_operand.hbm [shape: f32[24,128], index: 1, kind: input, shape index: {}]   ;;  %s927_s2 = inlined_call_operand.hbm [shape: f32[24,128], index: 2, kind: output, shape index: {0}]   ;;  %s928_s3 = inlined_call_operand.vmem [shape: f32[24,1], index: 3, kind: output, shape index: {1}]  }
   0x1   :  { %11 = vsyncpa [#allocation3 + $0x1], 0 }
   0x2   :  { %12 = vsyncpa [#allocation6], 0 }
   0x3   :  { %14 = vsyncpa [#allocation6 + $0x1], 0 }
   0x4   :  { %15 = vsyncpa [#allocation4], 0 }
   0x5   :  { %17 = vsyncpa [#allocation4 + $0x1], 0  ;;  %s730_s12 = smov 0   ;;  %s732_s13 = smov 0  }
   0x6   :  { %s734_s14 = smov 0   ;;  %s736_s15 = smov 0  }
   0x7 LB: > { %s751_s16 = sadd.s32 4294967295, %s703_s15   ;;  %s508_s17 = sadd.s32 4294967294, %s703_s15   ;;  %s703_s15 = sphi %s736_s15, %s944_s15   ;;  %s699_s14 = sphi %s734_s14, %s943_s14   ;;  %s695_s13 = sphi %s732_s13, %s942_s13   ;;  %s691_s12 = sphi %s730_s12, %s941_s12  }
   0x8   : > { %s755_s18 = sadd.s32 1, %s703_s15   ;;  %s30_s19 = sadd.s32 1, %s699_s14 }
   0x9   : > { %s27_s20 = ssub.s32 %s703_s15, %s755_s18  ;;  %p37_p0 = scmp.ne.s32.totalorder %s699_s14, %s695_s13 }
   0xa   : > { %p28_p1 = scmp.eq.s32.totalorder %s27_s20, 0  ;;  %p38_p2 = scmp.eq.s32.totalorder %s703_s15, 0 }
   0xb   : > { %p43_p3 = scmp.ne.s32.totalorder %s695_s13, %s691_s12  ;;  %p44_p4 = scmp.eq.s32.totalorder %s751_s16, 0 }
   0xc   : > { %s767_s21 = scalar_select %p28_p1, %s699_s14, %s30_s19  }
   0xd   : > { %p769_p5 = por %p38_p2, %p37_p0  ;;  %p773_p6 = por %p44_p4, %p43_p3 }
   0xe   : > { %p93_p7 = scmp.eq.s32.totalorder %s751_s16, 2  ;;  %p99_p8 = scmp.eq.s32.totalorder %s508_s17, 2 }
   0xf   : > { %s932_s23 = scalar_select %p773_p6, 1, 0 }
  0x10   : > { %p543_p9 = scmp.lt.s32.totalorder %s703_s15, 3  ;;  %p779_p10 = por %p93_p7, %p37_p0 }
  0x11   : > { %p783_p11 = por %p99_p8, %p43_p3  ;;  %s788_s26 = sand.u32 1, %s699_s14  }
  0x12   : > { %s933_s24 = scalar_select %p779_p10, 1, 0 }
  0x13   : > { %s934_s25 = scalar_select %p783_p11, 1, 0 }
  0x14   : > { %s525_s27 = sshll.u32 %s703_s15, 10  ;;  %s511_s28 = sshll.u32 %s788_s26, 6 }
  0x15   : > { %s795_s4 = scalar_lea.hbm %s925_s0, %s525_s27  ;;  %s149_s5 = scalar_lea.vmem [#allocation2], %s511_s28 }
  0x16   : > { %s156_s6 = sshll.u32 %s149_s5, 4  ;;  %p799_p12 = pnand %p543_p9, %p769_p5  ;;  %s803_s6 = int_to_ptr.vmem [resolvable:$true] %s156_s6 }
  0x17   : > { %s146_s8 = scalar_lea.sflag [#allocation3], %s788_s26  ;;  %s579_s9 = scalar_lea.hbm %s795_s4, 1024 }
  0x18   : > { %p580_p13 = scmp.ne.s32.totalorder %s795_s4, %s579_s9  ;;  %p581_p0 = pneg %p799_p12 }
  0x19   : > { %s584_s17 = scalar_lea.hbm %s925_s0, 3072  ;;  %p585_p3 = scmp.lt.s32.totalorder %s795_s4, %s925_s0 }
  0x1a   : > { %p582_p1 = pnand %p581_p0, %p580_p13  ;;  %p586_p4 = scmp.lt.s32.totalorder %s584_s17, %s579_s9 }
  0x1c   : > { %p583_p2 = pneg %p582_p1  ;;  %p587_p5 = por %p586_p4, %p585_p3 }
  0x1e   : > { %p588_p7 = pnand %p587_p5, %p583_p2 }
  0x20   : > { %591 = shalt.err (!%p588_p7)
}
  0x21   : > { %s592_s22 = scalar_lea.vmem %s803_s6, 1024  ;;  %s705_s27 = smov [#allocation2]  }
  0x22   : > { %p593_p8 = scmp.ne.s32.totalorder %s803_s6, %s592_s22  ;;  %s597_s28 = sshll.u32 %s705_s27, 4  ;;  %s598_s28 = int_to_ptr.vmem [resolvable:$false] %s597_s28 }
  0x23   : > { %s599_s29 = scalar_lea.vmem %s598_s28, 2048  ;;  %p600_p1 = scmp.lt.s32.totalorder %s803_s6, %s598_s28 }
  0x24   : > { %p595_p9 = pnand %p593_p8, %p581_p0  ;;  %p601_p11 = scmp.lt.s32.totalorder %s599_s29, %s592_s22 }
  0x26   : > { %p596_p13 = pneg %p595_p9  ;;  %p602_p10 = por %p601_p11, %p600_p1 }
  0x28   : > { %p603_p3 = pnand %p602_p10, %p596_p13 }
  0x2a   : > { %606 = shalt.err (!%p603_p3)
}
  0x2b   : > { %s706_s30 = smov 128   ;;  %s707_s5 = smov 8  }
  0x2c   : > { %535 = dma.hbm_to_vmem [thread:$0]  (!%p799_p12), %s795_s4, 1024, %s803_s6, %s146_s8, %s706_s30, %s706_s30, %s707_s5  }
  0x2d   : > { %p516_p2 = scmp.ge.s32.totalorder %s703_s15, 1  ;;  %p182_p4 = scmp.lt.s32.totalorder %s703_s15, 4 }
  0x2e   : > { %s514_s9 = sshll.u32 %s788_s26, 3  ;;  %s515_s11 = sshll.u32 %s703_s15, 7 }
  0x2f   : > { %p835_p10 = pnand %p516_p2, %p182_p4  ;;  %s170_s17 = scalar_lea.vmem [#allocation5], %s514_s9 }
  0x30   : > { %s177_s19 = sshll.u32 %s170_s17, 4  ;;  %s175_s27 = scalar_lea.hbm %s926_s1, %s515_s11  ;;  %s178_s19 = int_to_ptr.vmem [resolvable:$true] %s177_s19 }
  0x31   : > { %s936_s10 = scalar_select %p835_p10, 1, 0 }
  0x32   : > { %s167_s28 = scalar_lea.sflag [#allocation6], %s788_s26  ;;  %s607_s29 = scalar_lea.hbm %s175_s27, 128 }
  0x33   : > { %p608_p11 = scmp.ne.s32.totalorder %s175_s27, %s607_s29  ;;  %s612_s8 = scalar_lea.hbm %s926_s1, 384 }
  0x34   : > { %p613_p8 = scmp.lt.s32.totalorder %s175_s27, %s926_s1  ;;  %p614_p9 = scmp.lt.s32.totalorder %s612_s8, %s607_s29 }
  0x35   : > { %p610_p5 = pnand %p608_p11, %p581_p0 }
  0x36   : > { %p615_p13 = por %p614_p9, %p613_p8 }
  0x37   : > { %p611_p7 = pneg %p610_p5 }
  0x39   : > { %p616_p1 = pnand %p615_p13, %p611_p7 }
  0x3b   : > { %619 = shalt.err (!%p616_p1)
}
  0x3c   : > { %s620_s9 = scalar_lea.vmem %s178_s19, 128  ;;  %s708_s26 = smov [#allocation5]  }
  0x3d   : > { %p621_p3 = scmp.ne.s32.totalorder %s178_s19, %s620_s9  ;;  %s625_s11 = sshll.u32 %s708_s26, 4  ;;  %s626_s11 = int_to_ptr.vmem [resolvable:$false] %s625_s11 }
  0x3e   : > { %s627_s17 = scalar_lea.vmem %s626_s11, 256  ;;  %p628_p11 = scmp.lt.s32.totalorder %s178_s19, %s626_s11 }
  0x3f   : > { %p623_p2 = pnand %p621_p3, %p581_p0  ;;  %p629_p5 = scmp.lt.s32.totalorder %s627_s17, %s620_s9 }
  0x41   : > { %p624_p4 = pneg %p623_p2  ;;  %p630_p6 = por %p629_p5, %p628_p11 }
  0x43   : > { %p631_p10 = pnand %p630_p6, %p624_p4 }
  0x45   : > { %634 = shalt.err (!%p631_p10)
}
  0x46   : > { %538 = dma.hbm_to_vmem [thread:$0]  (!%p799_p12), %s175_s27, 128, %s178_s19, %s167_s28  }
  0x47   : > { %p937_p7 = scmp.ne.s32.totalorder %s936_s10, 0 }
  0x48   : > { %s861_s20 = sand.u32 (!%p937_p7), 1, %s695_s13   ;;  %p938_p0 = scmp.ne.s32.totalorder (!%p937_p7), %s932_s23, 0 }
  0x49   : > { %186 = sbr.rel (%p937_p7) target bundleno = 248 (0xf8), region = 28  ;;  %s517_s22 = sshll.u32 (!%p937_p7), %s861_s20, 6 }
  0x4a   : > { %s189_s29 = scalar_lea.sflag (!%p937_p7), [#allocation3], %s861_s20  ;;  %s192_s4 = scalar_lea.vmem (!%p937_p7), [#allocation2], %s517_s22 }
  0x4e   : > { %678 = dma.done.wait (%p938_p0), %s189_s29, 1024  }
  0x4f   : > { %680 = vsyncadd (%p938_p0), %s189_s29, 4294966272  ;;  %s518_s7 = sshll.u32 %s861_s20, 3  ;;  %s198_s10 = scalar_lea.sflag [#allocation6], %s861_s20 }
  0x50   : > { %s873_s19 = scalar_lea.vmem [#allocation5], %s518_s7 }
  0x51   : > { %682 = dma.done.wait (%p938_p0), %s198_s10, 128  }
  0x52   : > { %684 = vsyncadd (%p938_p0), %s198_s10, 4294967168  ;;  %v238_v0 = vld [vmem:[%s192_s4] sm:$0xff]  ;;  %v239_v1 = vld [vmem:[%s192_s4 + $0x8] sm:$0xff]  ;;  %vm302_vm0 = vcmask 1041409   ;;  %vm304_vm1 = vcmask 1042434   ;;  %vm306_vm2 = vcmask 1043459  }
  0x53   : > { %v240_v2 = vld [vmem:[%s192_s4 + $0x10] sm:$0xff]  ;;  %v241_v3 = vld [vmem:[%s192_s4 + $0x18] sm:$0xff]  ;;  %v242_v4 = vld [vmem:[%s192_s4 + $0x20] sm:$0xff]  ;;  %v246_v6 = vrot.slane %v238_v0, 4  ;;  %v252_v7 = vrot.slane %v239_v1, 4  ;;  %vm308_vm3 = vcmask 1044484  }
  0x54   : > { %v243_v5 = vld [vmem:[%s192_s4 + $0x28] sm:$0xff]  ;;  %v258_v8 = vrot.slane %v240_v2, 4  ;;  %v244_v9 = vld [vmem:[%s192_s4 + $0x30] sm:$0xff]  ;;  %v245_v10 = vld [vmem:[%s192_s4 + $0x38] sm:$0xff]  ;;  %v264_v11 = vrot.slane %v241_v3, 4  ;;  %v270_v12 = vrot.slane %v242_v4, 4 }
  0x55   : > { %v276_v13 = vrot.slane %v243_v5, 4  ;;  %v247_v14 = vadd.f32 %v246_v6, %v238_v0  ;;  %v253_v15 = vadd.f32 %v252_v7, %v239_v1  ;;  %v282_v17 = vrot.slane %v244_v9, 4  ;;  %v318_v46 = vld [vmem:[%s873_s19] sm:$0xff]  ;;  %s226_s23 = scalar_lea.vmem [#allocation7], %s518_s7  ;;  %s522_s27 = sshll.u32 %s751_s16, 7 }
  0x56   : > { %v259_v16 = vadd.f32 %v258_v8, %v240_v2  ;;  %v265_v18 = vadd.f32 %v264_v11, %v241_v3  ;;  %v271_v19 = vadd.f32 %v270_v12, %v242_v4  ;;  %v288_v21 = vrot.slane %v245_v10, 4  ;;  %s388_s28 = sshll.u32 %s226_s23, 4  ;;  %s386_s30 = scalar_lea.hbm %s927_s2, %s522_s27  ;;  %s389_s28 = int_to_ptr.vmem [resolvable:$true] %s388_s28 }
  0x57   : > { %v277_v20 = vadd.f32 %v276_v13, %v243_v5  ;;  %v248_v22 = vrot.slane %v247_v14, 2  ;;  %v254_v23 = vrot.slane %v253_v15, 2  ;;  %v283_v25 = vadd.f32 %v282_v17, %v244_v9  ;;  %s371_s5 = scalar_lea.sflag [#allocation4], %s861_s20  ;;  %s635_s9 = scalar_lea.vmem %s389_s28, 128 }
  0x58   : > { %v260_v24 = vrot.slane %v259_v16, 2  ;;  %v266_v26 = vrot.slane %v265_v18, 2  ;;  %v272_v27 = vrot.slane %v271_v19, 2  ;;  %v289_v29 = vadd.f32 %v288_v21, %v245_v10  ;;  %p636_p6 = scmp.ne.s32.totalorder %s389_s28, %s635_s9  ;;  %p939_p12 = scmp.ne.s32.totalorder %s933_s24, 0 }
  0x59   : > { %v278_v28 = vrot.slane %v277_v20, 2  ;;  %v249_v30 = vadd.f32 %v248_v22, %v247_v14  ;;  %v255_v31 = vadd.f32 %v254_v23, %v253_v15  ;;  %v284_v33 = vrot.slane %v283_v25, 2  ;;  %s709_s26 = smov [#allocation7]  }
  0x5a   : > { %v261_v32 = vadd.f32 %v260_v24, %v259_v16  ;;  %v267_v34 = vadd.f32 %v266_v26, %v265_v18  ;;  %v273_v35 = vadd.f32 %v272_v27, %v271_v19  ;;  %v290_v37 = vrot.slane %v289_v29, 2  ;;  %p637_p10 = pnand %p636_p6, %p939_p12  ;;  %s639_s11 = sshll.u32 %s709_s26, 4  ;;  %s640_s11 = int_to_ptr.vmem [resolvable:$false] %s639_s11 }
  0x5b   : > { %v279_v36 = vadd.f32 %v278_v28, %v277_v20  ;;  %v250_v38 = vrot.slane %v249_v30, 1  ;;  %v256_v39 = vrot.slane %v255_v31, 1  ;;  %v285_v41 = vadd.f32 %v284_v33, %v283_v25  ;;  %s641_s17 = scalar_lea.vmem %s640_s11, 256  ;;  %p642_p9 = scmp.lt.s32.totalorder %s389_s28, %s640_s11 }
  0x5c   : > { %v262_v40 = vrot.slane %v261_v32, 1  ;;  %v268_v42 = vrot.slane %v267_v34, 1  ;;  %v274_v43 = vrot.slane %v273_v35, 1  ;;  %v291_v45 = vadd.f32 %v290_v37, %v289_v29  ;;  %p638_p8 = pneg %p637_p10  ;;  %p643_p13 = scmp.lt.s32.totalorder %s641_s17, %s635_s9 }
  0x5d   : > { %v280_v44 = vrot.slane %v279_v36, 1  ;;  %v251_v47 = vadd.f32 %v250_v38, %v249_v30  ;;  %v257_v48 = vadd.f32 %v256_v39, %v255_v31  ;;  %v286_v49 = vrot.slane %v285_v41, 1 }
  0x5e   : > { %v263_v50 = vadd.f32 %v262_v40, %v261_v32  ;;  %v269_v51 = vadd.f32 %v268_v42, %v267_v34  ;;  %v275_v52 = vadd.f32 %v274_v43, %v273_v35  ;;  %v292_v53 = vrot.slane %v291_v45, 1  ;;  %p644_p1 = por %p643_p13, %p642_p9 }
  0x5f   : > { %v281_v54 = vadd.f32 %v280_v44, %v279_v36  ;;  %v287_v55 = vadd.f32 %v286_v49, %v285_v41  ;;  %v320_v56 = vrot.slane %v318_v46, 1  ;;  %v321_v57 = vrot.slane %v318_v46, 2 }
  0x60   : > { %v293_v58 = vadd.f32 %v292_v53, %v291_v45  ;;  %v303_v59 = vsel %vm302_vm0, %v257_v48, %v251_v47  ;;  %v322_v60 = vrot.slane %v318_v46, 3  ;;  %v323_v61 = vrot.slane %v318_v46, 4  ;;  %p645_p3 = pnand %p644_p1, %p638_p8 }
  0x61   : > { %v324_v62 = vrot.slane %v318_v46, 5  ;;  %v325_v63 = vrot.slane %v318_v46, 6  ;;  %v326_v0 = vrot.slane %v318_v46, 7  ;;  %v335_v1 = vmul.f32 %v318_v46, %v251_v47 }
  0x62   : > { %v336_v2 = vmul.f32 %v320_v56, %v257_v48  ;;  %v337_v3 = vmul.f32 %v321_v57, %v263_v50  ;;  %v305_v4 = vsel %vm304_vm1, %v263_v50, %v303_v59  ;;  %v338_v5 = vmul.f32 %v322_v60, %v269_v51 }
  0x63   : > { %v339_v6 = vmul.f32 %v323_v61, %v275_v52  ;;  %v340_v7 = vmul.f32 %v324_v62, %v281_v54  ;;  %v341_v8 = vmul.f32 %v325_v63, %v287_v55  ;;  %v342_v9 = vmul.f32 %v326_v0, %v293_v58 }
  0x64   : > { %v351_v10 = vrot.slane %v336_v2, 7  ;;  %v353_v11 = vrot.slane %v337_v3, 6  ;;  %v355_v12 = vrot.slane %v338_v5, 5  ;;  %v307_v14 = vsel %vm306_vm2, %v269_v51, %v305_v4 }
  0x65   : > { %v357_v13 = vrot.slane %v339_v6, 4  ;;  %v359_v16 = vrot.slane %v340_v7, 3  ;;  %vm310_vm4 = vcmask 1045509   ;;  %v361_v18 = vrot.slane %v341_v8, 2 }
  0x66   : > { %v352_v15 = vsel %vm302_vm0, %v351_v10, %v335_v1  ;;  %vm312_vm5 = vcmask 1046534   ;;  %v363_v20 = vrot.slane %v342_v9, 1  ;;  %v309_v21 = vsel %vm308_vm3, %v275_v52, %v307_v14 }
  0x67   : > { %v354_v17 = vsel %vm304_vm1, %v353_v11, %v352_v15  ;;  %vm314_vm6 = vcmask 1047559   ;;  %v311_v25 = vsel %vm310_vm4, %v281_v54, %v309_v21 }
  0x68   : > { %v356_v19 = vsel %vm306_vm2, %v355_v12, %v354_v17  ;;  %v313_v27 = vsel %vm312_vm5, %v287_v55, %v311_v25 }
  0x69   : > { %v358_v22 = vsel %vm308_vm3, %v357_v13, %v356_v19  ;;  %v315_v28 = vsel %vm314_vm6, %v293_v58, %v313_v27 }
  0x6a   : > { %v360_v23 = vsel %vm310_vm4, %v359_v16, %v358_v22  ;;  %317 = vst [vmem:[%s226_s23] sm:$0xff] %v315_v28 }
  0x6b   : > { %v362_v24 = vsel %vm312_vm5, %v361_v18, %v360_v23 }
  0x6c   : > { %v364_v26 = vsel %vm314_vm6, %v363_v20, %v362_v24 }
  0x6d   : > { %366 = vadd.xlane.f32.xlu0 %v364_v26 }
  0x6e   : > { %648 = shalt.err (!%p645_p3)
}
  0x6f   : > { %s649_s22 = scalar_lea.hbm %s386_s30, 128  ;;  %s653_s4 = scalar_lea.hbm %s927_s2, 384 }
  0x70   : > { %p650_p2 = scmp.ne.s32.totalorder %s386_s30, %s649_s22  ;;  %p654_p5 = scmp.lt.s32.totalorder %s386_s30, %s927_s2 }
  0x71   : > { %p655_p7 = scmp.lt.s32.totalorder %s653_s4, %s649_s22 }
  0x72   : > { %p651_p4 = pnand %p650_p2, %p939_p12 }
  0x73   : > { %p656_p0 = por %p655_p7, %p654_p5 }
  0x74   : > { %p652_p11 = pneg %p651_p4 }
  0x76   : > { %p657_p6 = pnand %p656_p0, %p652_p11 }
  0x78   : > { %660 = shalt.err (!%p657_p6)
}
  0x79   : > { %530 = dma.vmem_to_hbm [thread:$0]  (%p939_p12), %s389_s28, 128, %s386_s30, %s371_s5   ;;  %vm368_vm7 = vcmask 7168  }
  0x7a   : > { %p234_p10 = scmp.lt.s32.totalorder %s751_s16, 2 }
  0x7c   : > { %s946_s16 = smov (!%p234_p10, %s751_s16), 2 }
  0x7d   : > { %s520_s19 = sshll.u32 %s946_s16, 3 }
  0x7e   : > { %s237_s6 = scalar_lea.vmem %s928_s3, %s520_s19 }
  0xf6   : > { %v367_v29 = vpop.xlane.xlu0 %366 }
  0xf7   : > { %369 = vst.msk [vmem:[%s237_s6] sm:$0xff] %vm368_vm7, %v367_v29 }
  0xf8 PF: > { %p544_p8 = scmp.ge.s32.totalorder %s703_s15, 2  ;;  %s403_s8 = sand.u32 1, %s691_s12  }
  0xf9   : > { %p940_p9 = scmp.ne.s32.totalorder %s934_s25, 0  ;;  %s404_s24 = scalar_lea.sflag [#allocation4], %s403_s8 }
  0xfb   : > { %p540_p13 = pnand %p544_p8, %p940_p9 }
  0xfd   : > { %p541_p1 = pneg %p540_p13 }
  0xff   : > { %686 = dma.done.wait (%p541_p1), %s404_s24, 128  }
 0x100   : > { %688 = vsyncadd (%p541_p1), %s404_s24, 4294967168  ;;  %p20_p12 = scmp.ge.s32.totalorder %s755_s18, 5   ;;  %s941_s12 = smov %s695_s13 }
 0x101   : > { %s942_s13 = smov %s699_s14  ;;  %s943_s14 = smov %s767_s21 }
 0x102   : > { %s944_s15 = smov %s755_s18  ;;  %22 = sbr.rel (!%p20_p12) target bundleno = 7 (0x7), region = 98 }
 0x107   :  { %416 = vsyncpa [#allocation3], 1 }
 0x108   :  { %418 = vsyncpa [#allocation3 + $0x1], 1 }
 0x109   :  { %419 = vsyncpa [#allocation6], 1 }
 0x10a   :  { %421 = vsyncpa [#allocation6 + $0x1], 1 }
 0x10b   :  { %422 = vsyncpa [#allocation4], 1 }
 0x10c   :  { %424 = vsyncpa [#allocation4 + $0x1], 1 }

</bundles_post_ra>
